<compile_context>
chip_gen: v5e
topology: v5e:2x2
jax: 0.10.0
libtpu: 0.0.40
codegen_flags: <defaults>
</compile_context>

<pallas_src>
import jax
import jax.numpy as jnp
from jax.experimental import pallas as pl
from jax.experimental.pallas import tpu as pltpu


def _round_up(x: int, m: int) -> int:
    return (x + m - 1) // m * m


def _choose_tk(d_in: int, cap: int = 2048):
    """Largest 128-multiple tile <= cap that divides the 128-rounded reduction dim.

    For the canonical 256ch x 7x7 head (d_in = 12544 = 128*98) this gives
    tk = 1792 and d_p == d_in: no K padding, no wasted k steps.
    """
    d_p = _round_up(d_in, 128)
    m = d_p // 128
    q_best = 1
    for q in range(1, m + 1):
        if m % q == 0 and 128 * q <= cap:
            q_best = q
    return 128 * q_best, d_p


def _pad_to(a, shape, dtype):
    """Zero-pad `a` up to `shape` and cast to `dtype`; no-op if already there."""
    if tuple(a.shape) == tuple(shape):
        return a if a.dtype == dtype else a.astype(dtype)
    out = jnp.zeros(shape, dtype)
    return out.at[tuple(slice(0, s) for s in a.shape)].set(a.astype(dtype))


# --------------------------------------------------------------------------
# Pallas kernel: fused  relu(relu(X @ W6 + b6) @ W7 + b7)
#   grid = (row_tiles, k_tiles); fc6 accumulated over k into f32 scratch that
#   is seeded with b6, epilogue (ReLU/fc7/bias/ReLU) only on the last k step.
# --------------------------------------------------------------------------
def _fused_mlp_kernel(x_ref, w6_ref, b6_ref, w7_ref, b7_ref, out_ref, acc_ref):
    k = pl.program_id(1)

    @pl.when(k == 0)
    def _init():
        # Seed the accumulator with fc6's bias: removes one (tm, H) f32 VPU add
        # from the epilogue (the only non-MXU work on the last k step).
        acc_ref[...] = jnp.broadcast_to(b6_ref[...], acc_ref.shape)

    # Every k step is a pure MXU push: bf16 x bf16 -> f32 accumulate.
    acc_ref[...] += jnp.dot(x_ref[...], w6_ref[...],
                            preferred_element_type=jnp.float32)

    @pl.when(k == pl.num_programs(1) - 1)
    def _finalize():
        h = jnp.maximum(acc_ref[...], 0.0).astype(w7_ref.dtype)      # relu(fc6)
        o = jnp.dot(h, w7_ref[...],
                    preferred_element_type=jnp.float32) + b7_ref[...]
        out_ref[...] = jnp.maximum(o, 0.0).astype(out_ref.dtype)     # relu(fc7)


def fused_mlp(x, w6, b6, w7, b7, *, out_features=None, tm=None, tk=None,
              out_dtype=jnp.bfloat16):
    """relu(relu(x @ w6 + b6) @ w7 + b7), f32 accumulation, bf16 streams.

    x : (R, d_in); w6 : (d_in|d_p, H|H_p) in (in, out) layout (may be
    pre-padded bf16); b6/b7 : (1, H|H_p); w7 : (H|H_p, H|H_p).
    Returns (R, out_features) in `out_dtype`.
    """
    R, d_in = x.shape
    H = int(out_features) if out_features is not None else int(w7.shape[1])

    # --- TPU-friendly padded extents -----------------------------------------
    H_p = _round_up(max(H, int(w7.shape[1])), 128)     # lane-dense MXU N dim
    if tk is None:
        tk, d_p = _choose_tk(int(w6.shape[0]))
    else:
        d_p = _round_up(int(w6.shape[0]), tk)
    if tm is None:
        # Cap at 768: each k step stays MXU-bound (not W6-DMA-bound) on
        # v5e/v6e/v7x, and R > 768 splits into >= 2 row tiles so the
        # "parallel" grid axis feeds both v7x TensorCores.  Small batches get
        # a single row tile (W6 streamed from HBM exactly once).
        row_cap = 768
        n_row_tiles = -(-R // row_cap)
        tm = _round_up(-(-R // n_row_tiles), 8)
    R_p = _round_up(R, tm)

    # --- padding / casts (static no-ops when the module pre-padded params) ----
    x_p = _pad_to(x, (R_p, d_p), jnp.bfloat16)
    w6_p = _pad_to(w6, (d_p, H_p), jnp.bfloat16)
    w7_p = _pad_to(w7, (H_p, H_p), jnp.bfloat16)
    b6_p = _pad_to(b6.reshape(1, -1), (1, H_p), jnp.float32)
    b7_p = _pad_to(b7.reshape(1, -1), (1, H_p), jnp.float32)

    grid = (R_p // tm, d_p // tk)
    n_row_tiles = grid[0]
    out_isize = jnp.dtype(out_dtype).itemsize

    # VMEM budget: double-buffered streamed tiles + resident W7/biases + acc.
    # Raise the scoped limit explicitly (headroom on v7x's 64 MiB part).
    vmem_bytes = (2 * tm * tk * 2          # X tile, double-buffered bf16
                  + 2 * tk * H_p * 2       # W6 tile, double-buffered bf16
                  + 2 * H_p * H_p * 2      # W7 (constant block; budget 2 copies)
                  + 4 * 2 * H_p * 4        # biases
                  + 2 * tm * H_p * out_isize   # output, double-buffered
                  + tm * H_p * 4)          # f32 accumulator scratch
    vmem_limit = int(min(max(vmem_bytes * 5 // 4, 32 * 1024 * 1024),
                         56 * 1024 * 1024))

    flops = 2 * R_p * d_p * H_p + 2 * R_p * H_p * H_p
    bytes_accessed = (
        R_p * d_p * 2                      # X read once (bf16)
        + n_row_tiles * d_p * H_p * 2      # W6 streamed once PER ROW TILE
        + H_p * H_p * 2                    # W7 resident (read once)
        + 2 * H_p * 4                      # biases
        + R_p * H_p * out_isize            # output writeback
    )

    out = pl.pallas_call(
        _fused_mlp_kernel,
        out_shape=jax.ShapeDtypeStruct((R_p, H_p), out_dtype),
        grid_spec=pltpu.PrefetchScalarGridSpec(
            num_scalar_prefetch=0,
            grid=grid,
            in_specs=[
                pl.BlockSpec((tm, tk), lambda i, k: (i, k)),     # X tile (streamed)
                pl.BlockSpec((tk, H_p), lambda i, k: (k, 0)),    # W6 tile (streamed)
                pl.BlockSpec((1, H_p), lambda i, k: (0, 0)),     # b6 (resident)
                pl.BlockSpec((H_p, H_p), lambda i, k: (0, 0)),   # W7 (resident)
                pl.BlockSpec((1, H_p), lambda i, k: (0, 0)),     # b7 (resident)
            ],
            out_specs=pl.BlockSpec((tm, H_p), lambda i, k: (i, 0)),
            scratch_shapes=[pltpu.VMEM((tm, H_p), jnp.float32)],
        ),
        compiler_params=pltpu.CompilerParams(
            dimension_semantics=("parallel", "arbitrary"),
            vmem_limit_bytes=vmem_limit,
        ),
        cost_estimate=pl.CostEstimate(
            flops=flops, transcendentals=0, bytes_accessed=bytes_accessed),
    )(x_p, w6_p, b6_p, w7_p, b7_p)

    return out[:R, :H]


# --------------------------------------------------------------------------
# Plain-JAX glue: single-level ROIAlign as interpolation MATMULS (no gathers).
# pooled[b,c,r,s] = sum_{n,h,w} OH[b,n] * Wy[b,r,h] * feat[n,c,h,w] * Wx[b,s,w]
# The per-RoI image one-hot is folded into Wy so the (R,C,Hf,Wf) gather of
# whole feature maps never materializes; contractions run in bf16 on the MXU.
# --------------------------------------------------------------------------
def roi_align(feat, rois, resolution, spatial_scale=1.0, sampling_ratio=2,
              out_dtype=jnp.bfloat16):
    """feat: (N, C, H, W); rois: (R, 5) as [batch_idx, x1, y1, x2, y2].
    Returns pooled RoI features (R, C, resolution, resolution) in `out_dtype`."""
    N, C, Hf, Wf = feat.shape
    R = rois.shape[0]

    batch_idx = rois[:, 0].astype(jnp.int32)
    x1 = (rois[:, 1] * spatial_scale).astype(jnp.float32)
    y1 = (rois[:, 2] * spatial_scale).astype(jnp.float32)
    x2 = (rois[:, 3] * spatial_scale).astype(jnp.float32)
    y2 = (rois[:, 4] * spatial_scale).astype(jnp.float32)
    roi_w = jnp.maximum(x2 - x1, 1.0)
    roi_h = jnp.maximum(y2 - y1, 1.0)
    bin_w = roi_w / resolution
    bin_h = roi_h / resolution
    sr = sampling_ratio
    # TODO(synk): adaptive sampling_ratio (config POOLER_SAMPLING_RATIO <= 0
    # -> ceil(roi_size/output_size)) is not implemented.

    # sample-point grid (in units of bins), covering the whole RoI
    g = (jnp.arange(resolution * sr, dtype=jnp.float32) + 0.5) / sr
    ys = y1[:, None] + g[None, :] * bin_h[:, None]   # (R, res*sr)
    xs = x1[:, None] + g[None, :] * bin_w[:, None]   # (R, res*sr)

    def interp_matrix(coords, size):
        # Reference ROIAlign zeroes samples outside [-1, size] and clamps the
        # rest to [0, size-1] before bilinear interpolation.
        valid = ((coords >= -1.0) & (coords <= size)).astype(jnp.float32)
        c = jnp.clip(coords, 0.0, size - 1.0)
        c0 = jnp.floor(c).astype(jnp.int32)
        c1 = jnp.minimum(c0 + 1, size - 1)
        lo = c - c0.astype(jnp.float32)
        hi = 1.0 - lo
        oh0 = jax.nn.one_hot(c0, size, dtype=jnp.float32)        # (R, P, size)
        oh1 = jax.nn.one_hot(c1, size, dtype=jnp.float32)
        w = (hi[..., None] * oh0 + lo[..., None] * oh1) * valid[..., None]
        # fold the per-bin average over `sr` samples into the weights
        return w.reshape(R, resolution, sr, size).mean(axis=2)   # (R, res, size)

    Wy = interp_matrix(ys, Hf)                                    # (R, res, Hf)
    Wx = interp_matrix(xs, Wf)                                    # (R, res, Wf)

    # fold the per-RoI image selection into Wy -> no (R, C, Hf, Wf) gather
    onehot_b = jax.nn.one_hot(batch_idx, N, dtype=jnp.float32)    # (R, N)
    Wyb = (Wy[:, :, None, :] * onehot_b[:, None, :, None]).astype(jnp.bfloat16)

    tmp = jnp.einsum('brnh,nchw->bcrw', Wyb, feat.astype(jnp.bfloat16),
                     preferred_element_type=jnp.float32)          # (R, C, res, Wf)
    pooled = jnp.einsum('bcrw,bsw->bcrs', tmp.astype(jnp.bfloat16),
                        Wx.astype(jnp.bfloat16),
                        preferred_element_type=jnp.float32)       # (R, C, res, res)
    # TODO(synk): a dedicated Pallas ROIAlign kernel (scalar-prefetched box
    # coords + per-RoI windowed DMA) would avoid the (R,C,res,Wf) intermediate
    # at production FPN sizes.
    return pooled.astype(out_dtype)


# --------------------------------------------------------------------------
# Module wrapper
# --------------------------------------------------------------------------
class FPN2MLPFeatureExtractor:
    """pooler (single-level ROIAlign) -> flatten -> relu(fc6) -> relu(fc7)."""
    # TODO(synk): the multi-level FPN pooler (per-box level assignment over
    # P2..P5) is reduced to a single-level ROIAlign.

    def __init__(self, key, in_channels, resolution, representation_size,
                 spatial_scale=1.0, sampling_ratio=2):
        self.resolution = resolution
        self.in_channels = in_channels
        self.spatial_scale = spatial_scale
        self.sampling_ratio = sampling_ratio
        self.out_channels = representation_size

        d_in = in_channels * resolution ** 2
        self.d_in = d_in
        self.rep = representation_size
        # Tiling fixed per head: tk is a 128-multiple divisor of the
        # 128-rounded flattened pooled size -> no K padding, no wasted steps.
        self.tk, self.d_p = _choose_tk(d_in)
        self.h_p = _round_up(representation_size, 128)

        k6w, k6b, k7w, k7b = jax.random.split(key, 4)
        # deterministic synthetic init (make_fc -> nn.Linear, kaiming-ish scale)
        w6 = jax.random.normal(k6w, (d_in, representation_size),
                               jnp.float32) * (2.0 / d_in) ** 0.5
        b6 = jax.random.normal(k6b, (1, representation_size), jnp.float32) * 0.01
        w7 = jax.random.normal(k7w, (representation_size, representation_size),
                               jnp.float32) * (2.0 / representation_size) ** 0.5
        b7 = jax.random.normal(k7b, (1, representation_size), jnp.float32) * 0.01

        # Pad + cast ONCE here (weights in (in, out) layout, bf16; biases f32)
        # so no per-call HBM read+write pass re-materializes W6/W7.
        self.w6_p = _pad_to(w6, (self.d_p, self.h_p), jnp.bfloat16)
        self.b6_p = _pad_to(b6, (1, self.h_p), jnp.float32)
        self.w7_p = _pad_to(w7, (self.h_p, self.h_p), jnp.bfloat16)
        self.b7_p = _pad_to(b7, (1, self.h_p), jnp.float32)
        # TODO(synk): on v7x, W6 could optionally be stored fp8 (e4m3) to halve
        # the dominant HBM stream when the proposal count is small.

    def __call__(self, feats, rois):
        pooled = roi_align(feats, rois, self.resolution, self.spatial_scale,
                           self.sampling_ratio, out_dtype=jnp.bfloat16)
        x = pooled.reshape(pooled.shape[0], -1)              # (R, C*res*res) bf16
        return fused_mlp(x, self.w6_p, self.b6_p, self.w7_p, self.b7_p,
                         out_features=self.rep, tk=self.tk)  # (R, rep) bf16


# --------------------------------------------------------------------------
if __name__ == "__main__":
    key = jax.random.PRNGKey(0)
    kfeat, kbox, kparam = jax.random.split(key, 3)

    # small synthetic shapes
    N, C, Hf, Wf = 2, 4, 16, 16          # feature map  (NCHW)
    R = 8                                 # number of proposals
    RESOLUTION = 4                        # POOLER_RESOLUTION
    REP = 32                              # MLP_HEAD_DIM

    feats = jax.random.normal(kfeat, (N, C, Hf, Wf), jnp.float32)

    # proposals: [batch_idx, x1, y1, x2, y2] inside the feature map
    kx, ky, kw, kh = jax.random.split(kbox, 4)
    bi = (jnp.arange(R) % N).astype(jnp.float32)
    x1 = jax.random.uniform(kx, (R,), minval=0.0, maxval=8.0)
    y1 = jax.random.uniform(ky, (R,), minval=0.0, maxval=8.0)
    bw = jax.random.uniform(kw, (R,), minval=3.0, maxval=7.0)
    bh = jax.random.uniform(kh, (R,), minval=3.0, maxval=7.0)
    rois = jnp.stack(
        [bi, x1, y1,
         jnp.minimum(x1 + bw, Wf - 1.0), jnp.minimum(y1 + bh, Hf - 1.0)],
        axis=1,
    )

    model = FPN2MLPFeatureExtractor(kparam, in_channels=C,
                                    resolution=RESOLUTION,
                                    representation_size=REP)

    out = jax.block_until_ready(model(feats, rois))
    assert out.shape == (R, REP), out.shape
    assert out.dtype == jnp.bfloat16, out.dtype

    # cross-check the Pallas MLP against a pure-JAX reference with the same
    # bf16-in / f32-accumulate numerics (same pooled features feed both paths)
    x = roi_align(feats, rois, RESOLUTION, 1.0, 2).reshape(R, -1)   # bf16
    d_in = x.shape[1]
    ref_h = jnp.maximum(
        jnp.dot(x, model.w6_p[:d_in, :REP],
                preferred_element_type=jnp.float32) + model.b6_p[:, :REP], 0.0)
    ref = jnp.maximum(
        jnp.dot(ref_h.astype(jnp.bfloat16), model.w7_p[:REP, :REP],
                preferred_element_type=jnp.float32) + model.b7_p[:, :REP], 0.0)
    assert jnp.allclose(out.astype(jnp.float32), ref, atol=2e-2, rtol=2e-2)

    print("KERNEL_OK")
</pallas_src>

<mosaic_0001>
module attributes {stable_mosaic.version = 11 : i64} {
  func.func @_fused_mlp_kernel(%arg0: i32, %arg1: i32, %arg2: memref<8x128xbf16, #tpu.memory_space<vmem>>, %arg3: memref<128x128xbf16, #tpu.memory_space<vmem>>, %arg4: memref<1x128xf32, #tpu.memory_space<vmem>>, %arg5: memref<128x128xbf16, #tpu.memory_space<vmem>>, %arg6: memref<1x128xf32, #tpu.memory_space<vmem>>, %arg7: memref<8x128xbf16, #tpu.memory_space<vmem>>, %arg8: memref<8x128xf32, #tpu.memory_space<vmem>>) attributes {dimension_semantics = [#tpu.dimension_semantics<parallel>, #tpu.dimension_semantics<arbitrary>], iteration_bounds = array<i64: 1, 1>, scalar_prefetch = 0 : i64, scratch_operands = 1 : i64, tpu.core_type = #tpu.core_type<tc>, window_params = [{transform_indices = @transform_0, window_bounds = array<i64: 8, 128>}, {transform_indices = @transform_1, window_bounds = array<i64: 128, 128>}, {pipeline_mode = #tpu.pipeline_mode<synchronous>, transform_indices = @transform_2, window_bounds = array<i64: 1, 128>}, {pipeline_mode = #tpu.pipeline_mode<synchronous>, transform_indices = @transform_3, window_bounds = array<i64: 128, 128>}, {pipeline_mode = #tpu.pipeline_mode<synchronous>, transform_indices = @transform_4, window_bounds = array<i64: 1, 128>}, {transform_indices = @transform_5, window_bounds = array<i64: 8, 128>}]} {
    %c0_i32 = arith.constant 0 : i32
    %0 = arith.cmpi eq, %arg1, %c0_i32 : i32
    %1 = arith.extui %0 : i1 to i32
    %c0_i32_0 = arith.constant 0 : i32
    %2 = arith.cmpi ne, %1, %c0_i32_0 : i32
    scf.if %2 {
      %c0_10 = arith.constant 0 : index
      %c0_11 = arith.constant 0 : index
      %12 = vector.load %arg4[%c0_10, %c0_11] : memref<1x128xf32, #tpu.memory_space<vmem>>, vector<1x128xf32>
      %13 = vector.shape_cast %12 : vector<1x128xf32> to vector<1x128xf32>
      %14 = vector.broadcast %13 : vector<1x128xf32> to vector<8x128xf32>
      %c0_12 = arith.constant 0 : index
      %c0_13 = arith.constant 0 : index
      %15 = vector.load %arg8[%c0_12, %c0_13] : memref<8x128xf32, #tpu.memory_space<vmem>>, vector<8x128xf32>
      tpu.vector_store %arg8[%c0_12, %c0_13], %14 {strides = array<i32>} : memref<8x128xf32, #tpu.memory_space<vmem>>, vector<8x128xf32>,
    } else {
    }
    %c0 = arith.constant 0 : index
    %c0_1 = arith.constant 0 : index
    %3 = vector.load %arg8[%c0, %c0_1] : memref<8x128xf32, #tpu.memory_space<vmem>>, vector<8x128xf32>
    %c0_2 = arith.constant 0 : index
    %c0_3 = arith.constant 0 : index
    %4 = vector.load %arg2[%c0_2, %c0_3] : memref<8x128xbf16, #tpu.memory_space<vmem>>, vector<8x128xbf16>
    %c0_4 = arith.constant 0 : index
    %c0_5 = arith.constant 0 : index
    %5 = vector.load %arg3[%c0_4, %c0_5] : memref<128x128xbf16, #tpu.memory_space<vmem>>, vector<128x128xbf16>
    %cst = arith.constant dense<0.000000e+00> : vector<8x128xf32>
    %6 = tpu.matmul %4, %5, %cst {dimension_numbers = #tpu.dot_dimension_numbers<[1], [0], [0], [1], [0, 0, 1, 1], [], []>} : vector<8x128xbf16>, vector<128x128xbf16>, vector<8x128xf32> -> vector<8x128xf32>
    %7 = arith.addf %3, %6 : vector<8x128xf32>
    %c0_6 = arith.constant 0 : index
    %c0_7 = arith.constant 0 : index
    %8 = vector.load %arg8[%c0_6, %c0_7] : memref<8x128xf32, #tpu.memory_space<vmem>>, vector<8x128xf32>
    tpu.vector_store %arg8[%c0_6, %c0_7], %7 {strides = array<i32>} : memref<8x128xf32, #tpu.memory_space<vmem>>, vector<8x128xf32>,
    %c0_i32_8 = arith.constant 0 : i32
    %9 = arith.cmpi eq, %arg1, %c0_i32_8 : i32
    %10 = arith.extui %9 : i1 to i32
    %c0_i32_9 = arith.constant 0 : i32
    %11 = arith.cmpi ne, %10, %c0_i32_9 : i32
    scf.if %11 {
      %c0_10 = arith.constant 0 : index
      %c0_11 = arith.constant 0 : index
      %12 = vector.load %arg8[%c0_10, %c0_11] : memref<8x128xf32, #tpu.memory_space<vmem>>, vector<8x128xf32>
      %cst_12 = arith.constant 0.000000e+00 : f32
      %13 = vector.broadcast %cst_12 : f32 to vector<8x128xf32>
      %14 = arith.maximumf %12, %13 : vector<8x128xf32>
      %15 = arith.truncf %14 : vector<8x128xf32> to vector<8x128xbf16>
      %c0_13 = arith.constant 0 : index
      %c0_14 = arith.constant 0 : index
      %16 = vector.load %arg5[%c0_13, %c0_14] : memref<128x128xbf16, #tpu.memory_space<vmem>>, vector<128x128xbf16>
      %cst_15 = arith.constant dense<0.000000e+00> : vector<8x128xf32>
      %17 = tpu.matmul %15, %16, %cst_15 {dimension_numbers = #tpu.dot_dimension_numbers<[1], [0], [0], [1], [0, 0, 1, 1], [], []>} : vector<8x128xbf16>, vector<128x128xbf16>, vector<8x128xf32> -> vector<8x128xf32>
      %c0_16 = arith.constant 0 : index
      %c0_17 = arith.constant 0 : index
      %18 = vector.load %arg6[%c0_16, %c0_17] : memref<1x128xf32, #tpu.memory_space<vmem>>, vector<1x128xf32>
      %19 = vector.broadcast %18 : vector<1x128xf32> to vector<8x128xf32>
      %20 = arith.addf %17, %19 : vector<8x128xf32>
      %cst_18 = arith.constant 0.000000e+00 : f32
      %21 = vector.broadcast %cst_18 : f32 to vector<8x128xf32>
      %22 = arith.maximumf %20, %21 : vector<8x128xf32>
      %23 = arith.truncf %22 : vector<8x128xf32> to vector<8x128xbf16>
      %c0_19 = arith.constant 0 : index
      %c0_20 = arith.constant 0 : index
      %24 = vector.load %arg7[%c0_19, %c0_20] : memref<8x128xbf16, #tpu.memory_space<vmem>>, vector<8x128xbf16>
      tpu.vector_store %arg7[%c0_19, %c0_20], %23 {strides = array<i32>} : memref<8x128xbf16, #tpu.memory_space<vmem>>, vector<8x128xbf16>,
    } else {
    }
    return
  }
  func.func @transform_0(%arg0: i32, %arg1: i32) -> (i32, i32) {
    %c0_i32 = arith.constant 0 : i32
    return %arg0, %arg1 : i32, i32
  }
  func.func @transform_1(%arg0: i32, %arg1: i32) -> (i32, i32) {
    %c0_i32 = arith.constant 0 : i32
    %c0_i32_0 = arith.constant 0 : i32
    return %arg1, %c0_i32 : i32, i32
  }
  func.func @transform_2(%arg0: i32, %arg1: i32) -> (i32, i32) {
    %c0_i32 = arith.constant 0 : i32
    %c0_i32_0 = arith.constant 0 : i32
    %c0_i32_1 = arith.constant 0 : i32
    return %c0_i32, %c0_i32_0 : i32, i32
  }
  func.func @transform_3(%arg0: i32, %arg1: i32) -> (i32, i32) {
    %c0_i32 = arith.constant 0 : i32
    %c0_i32_0 = arith.constant 0 : i32
    %c0_i32_1 = arith.constant 0 : i32
    return %c0_i32, %c0_i32_0 : i32, i32
  }
  func.func @transform_4(%arg0: i32, %arg1: i32) -> (i32, i32) {
    %c0_i32 = arith.constant 0 : i32
    %c0_i32_0 = arith.constant 0 : i32
    %c0_i32_1 = arith.constant 0 : i32
    return %c0_i32, %c0_i32_0 : i32, i32
  }
  func.func @transform_5(%arg0: i32, %arg1: i32) -> (i32, i32) {
    %c0_i32 = arith.constant 0 : i32
    %c0_i32_0 = arith.constant 0 : i32
    return %arg0, %c0_i32 : i32, i32
  }
}

</mosaic_0001>

<bundles_post_ra>
// kernel: tpu_custom_call.1
= control target key start
LH: loop header
LB: loop body
LE: loop exit
PB: predicated region body
PF: predicated region fallthrough
CT: control target
= control target key end

     0   :  { %10 = vsyncpa [#allocation4], 0  ;;  %s508_s0 = inlined_call_operand.hbm [shape: bf16[8,128], index: 0, kind: input, shape index: {}]   ;;  %s509_s1 = inlined_call_operand.hbm [shape: bf16[128,128], index: 1, kind: input, shape index: {}]   ;;  %s510_s2 = inlined_call_operand.vmem [shape: f32[1,128], index: 2, kind: input, shape index: {}]   ;;  %s511_s3 = inlined_call_operand.hbm [shape: bf16[128,128], index: 3, kind: input, shape index: {}]   ;;  %s512_s4 = inlined_call_operand.vmem [shape: f32[1,128], index: 4, kind: input, shape index: {}]   ;;  %s513_s5 = inlined_call_operand.hbm [shape: bf16[8,128], index: 5, kind: output, shape index: {}]  }
   0x1   :  { %11 = vsyncpa [#allocation7], 0  ;;  %s28_s20 = sshll.u32 %s509_s1, 4  ;;  %s29_s20 = int_to_ptr.hbm [resolvable:$true] %s28_s20 }
   0x2   :  { %12 = vsyncpa [#allocation5], 0  ;;  %s454_s21 = smov [#allocation6]   ;;  %s18_s25 = sshll.u32 %s508_s0, 4  ;;  %s19_s25 = int_to_ptr.hbm [resolvable:$true] %s18_s25 }
   0x3   :  { %s30_s22 = sshll.u32 %s454_s21, 4  ;;  %s455_s26 = smov 64   ;;  %s31_s22 = int_to_ptr.vmem [resolvable:$true] %s30_s22 }
   0x4   :  { %s456_s27 = smov 4   ;;  %s457_s28 = smov [#allocation3]  }
   0x5   :  { %36 = dma.hbm_to_vmem [thread:$0]  %s29_s20, 1024, %s31_s22, [#allocation7], %s455_s26, %s455_s26, %s456_s27  }
   0x6   :  { %s20_s29 = sshll.u32 %s457_s28, 4  ;;  %s43_s7 = sshll.u32 %s511_s3, 4  ;;  %s21_s29 = int_to_ptr.vmem [resolvable:$true] %s20_s29  ;;  %s44_s7 = int_to_ptr.hbm [resolvable:$true] %s43_s7 }
   0x7   :  { %23 = dma.hbm_to_vmem [thread:$0]  %s19_s25, 64, %s21_s29, [#allocation4]  }
   0x8   :  { %s458_s1 = smov [#allocation8]  }
   0x9   :  { %s45_s8 = sshll.u32 %s458_s1, 4  ;;  %s46_s8 = int_to_ptr.vmem [resolvable:$true] %s45_s8 }
   0xa   :  { %51 = dma.hbm_to_vmem [thread:$0]  %s44_s7, 1024, %s46_s8, [#allocation7], %s455_s26, %s455_s26, %s456_s27  }
   0xb   :  { %448 = dma.done.wait [#allocation4], 64  }
   0xc   :  { %449 = vsyncadd [#allocation4], 4294967232 }
   0xd   :  { %450 = dma.done.wait [#allocation7], 2048  }
   0xe   :  { %451 = vsyncadd [#allocation7], 4294965248  ;;  %v335_v0 = vld [vmem:[#allocation6 + $0x38] sm:$0xff]  ;;  %v334_v1 = vld [vmem:[#allocation6 + $0x30] sm:$0xff]  ;;  %s459_s11 = smov [#allocation9]   ;;  %s253_s15 = sshll.u32 %s513_s5, 4  ;;  %s254_s15 = int_to_ptr.hbm [resolvable:$true] %s253_s15 }
   0xf   :  { %141 = vmatpush.bf16.msra.mxu0 %v335_v0  ;;  %v343_v2 = vld [vmem:[#allocation8 + $0x38] sm:$0xff]  ;;  %v342_v3 = vld [vmem:[#allocation8 + $0x30] sm:$0xff]  ;;  %v333_v4 = vld [vmem:[#allocation6 + $0x28] sm:$0xff]  ;;  %s251_s12 = sshll.u32 %s459_s11, 4  ;;  %s252_s12 = int_to_ptr.vmem [resolvable:$true] %s251_s12 }
  0x10   :  { %230 = vmatpush.bf16.msra.mxu1 %v343_v2  ;;  %v341_v5 = vld [vmem:[#allocation8 + $0x28] sm:$0xff]  ;;  %v332_v6 = vld [vmem:[#allocation6 + $0x20] sm:$0xff]  ;;  %v331_v8 = vld [vmem:[#allocation6 + $0x18] sm:$0xff] }
  0x11   :  { %v340_v7 = vld [vmem:[#allocation8 + $0x20] sm:$0xff]  ;;  %v339_v9 = vld [vmem:[#allocation8 + $0x18] sm:$0xff]  ;;  %v330_v10 = vld [vmem:[#allocation6 + $0x10] sm:$0xff] }
  0x12   :  { %v338_v11 = vld [vmem:[#allocation8 + $0x10] sm:$0xff]  ;;  %v329_v12 = vld [vmem:[#allocation6 + $0x8] sm:$0xff]  ;;  %v328_v13 = vld [vmem:[#allocation6] sm:$0xff] }
  0x13   :  { %142 = vmatpush.bf16.msra.mxu0 %v334_v1  ;;  %v76_v14 = vld [vmem:[#allocation3] sm:$0xf]  ;;  %v337_v15 = vld [vmem:[#allocation8 + $0x8] sm:$0xff]  ;;  %v336_v16 = vld [vmem:[#allocation8] sm:$0xff] }
  0x14   :  { %231 = vmatpush.bf16.msra.mxu1 %v342_v3  ;;  %v350_v17 = vld [vmem:[%s510_s2] ss:$0 sm:$0xff] }
  0x15   :  { %v351_v23 = vld [vmem:[%s512_s4] ss:$0 sm:$0xff] }
  0x17   :  { %143 = vmatpush.bf16.msra.mxu0 %v333_v4 }
  0x18   :  { %232 = vmatpush.bf16.msra.mxu1 %v341_v5 }
  0x1b   :  { %144 = vmatpush.bf16.msra.mxu0 %v332_v6 }
  0x1c   :  { %233 = vmatpush.bf16.msra.mxu1 %v340_v7 }
  0x1f   :  { %145 = vmatpush.bf16.msra.mxu0 %v331_v8 }
  0x20   :  { %234 = vmatpush.bf16.msra.mxu1 %v339_v9 }
  0x23   :  { %146 = vmatpush.bf16.msra.mxu0 %v330_v10 }
  0x24   :  { %235 = vmatpush.bf16.msra.mxu1 %v338_v11 }
  0x27   :  { %147 = vmatpush.bf16.msra.mxu0 %v329_v12 }
  0x28   :  { %236 = vmatpush.bf16.msra.mxu1 %v337_v15 }
  0x2b   :  { %148 = vmatpush.bf16.msra.mxu0 %v328_v13 }
  0x2c   :  { %237 = vmatpush.bf16.msra.mxu1 %v336_v16 }
  0x2e   :  { %149 = vmatmul.bf16.vlgmr.msra.gmra.mxu0 %v76_v14 }
  0xab   :  { %v150_v18 = vpop.f32.mrf.mxu0 }
  0xac   :  { %v154_v19 = vadd.f32 %v350_v17, %v150_v18 }
  0xae   :  { %v160_v20 = vmax.f32 %v154_v19, 0.0 }
  0xb0   :  { %v161_v21 = vpack.c.bf16 %v160_v20, %v160_v20 }
  0xb2   :  { %238 = vmatmul.bf16.vlgmr.msra.gmra.mxu1 %v161_v21 }
  0xb3   :  { %v152_v22 = vpop.f32.mrf.mxu0 }
 0x12f   :  { %v239_v24 = vpop.f32.mrf.mxu1 }
 0x130   :  { %v240_v25 = vadd.f32 %v351_v23, %v239_v24 }
 0x132   :  { %v243_v26 = vmax.f32 %v240_v25, 0.0 }
 0x134   :  { %v244_v27 = vpack.c.bf16 %v243_v26, %v243_v26 }
 0x136   :  { %245 = vst [vmem:[#allocation9] sm:$0xf] %v244_v27 }
 0x137   :  { %v241_v28 = vpop.f32.mrf.mxu1  ;;  %256 = dma.vmem_to_hbm [thread:$0]  %s252_s12, 64, %s254_s15, [#allocation5]  }
 0x138   :  { %452 = dma.done.wait [#allocation5], 64  }
 0x139   :  { %453 = vsyncadd [#allocation5], 4294967232 }
 0x13a   :  { %261 = vsyncpa [#allocation4], 1 }
 0x13b   :  { %262 = vsyncpa [#allocation7], 1 }
 0x13c   :  { %263 = vsyncpa [#allocation5], 1 }

</bundles_post_ra>
